<compile_context>
chip_gen: v6e
topology: v6e:2x2x1
jax: 0.10.0
libtpu: 0.0.40
codegen_flags: <defaults>
</compile_context>

<pallas_src>
import jax
import jax.numpy as jnp
from jax.experimental import pallas as pl
from jax.experimental.pallas import tpu as pltpu


def resblock_kernel(xp_ref, w1_ref, b1_ref, w2_ref, b2_ref, o_ref):
    # xp_ref: (B, H+2, WCp) bf16   B images, 1 zero halo row top/bottom, lanes = W*Cin_pad
    # w1_ref: (3*WCp, WM)   bf16   dy-fused banded conv1 weight (K = 3*W*Cin_pad)
    # b1_ref: (1, WM)       f32
    # w2_ref: (WM, WCp)     bf16   block-diagonal 1x1-conv weight
    # b2_ref: (1, WCp)      f32
    # o_ref : (B, H, WCp)
    B, Hp2, WCp = xp_ref.shape
    H = Hp2 - 2
    M = B * H

    # Single ReLU pass over the whole bf16 block (halo rows are already zero).
    h = jnp.maximum(xp_ref[...], 0)                        # (B, H+2, WCp) bf16

    # Three dy windows, flattened to (B*H, WCp): the row-wise matmul is batch-separable
    # (jnp.dot does not batch over a leading dim, so reshape before the matmul).
    h_up = h[:, 0:H, :].reshape(M, WCp)                    # rows r-1
    h_mid = h[:, 1:H + 1, :].reshape(M, WCp)               # rows r   (reused for residual)
    h_dn = h[:, 2:H + 2, :].reshape(M, WCp)                # rows r+1

    # 3x3 conv == ONE fused matmul: lane-concat the dy windows -> K = 3*WCp (128-aligned).
    hcat = jnp.concatenate([h_up, h_mid, h_dn], axis=-1)   # (M, 3*WCp) bf16
    acc = jnp.dot(hcat, w1_ref[...], preferred_element_type=jnp.float32)

    h1 = jnp.maximum(acc + b1_ref[...], 0.0)               # second ReLU (f32, VPU)

    # 1x1 conv as one block-diagonal matmul, then bias + residual (skip adds relu(x), f32).
    out = jnp.dot(h1.astype(jnp.bfloat16), w2_ref[...],
                  preferred_element_type=jnp.float32) + b2_ref[...]
    out = out + h_mid.astype(jnp.float32)                  # residual add stays f32
    o_ref[...] = out.reshape(B, H, WCp).astype(o_ref.dtype)


def pick_cin_pad(cin, W, lane=128):
    """Smallest padded channel count >= cin such that W*cin_pad is a multiple of 128."""
    cp = cin
    while (W * cp) % lane:
        cp += 1
    return cp


def _pick_block_n(N, max_b=8):
    """Largest divisor of N that is <= max_b (images per grid step)."""
    b = min(N, max_b)
    while N % b:
        b -= 1
    return b


def pack_resblock_weights(w1, b1, w2, b2, *, W, cin_pad):
    """Fold the 3x3 dx taps + channel contraction into a dy-fused banded block matrix.

    Parameter-only work (O(W^2) kron) -- call once and reuse across forward calls.
    """
    Cmid, Cin = int(w1.shape[0]), int(w1.shape[1])
    WCp, WM = W * cin_pad, W * Cmid

    bands = []
    for dy in range(3):
        band = jnp.zeros((WCp, WM), jnp.float32)
        for dx in range(3):
            tap = jnp.transpose(w1[:, :, dy, dx]).astype(jnp.float32)          # (Cin, Cmid)
            tap = jnp.zeros((cin_pad, Cmid), jnp.float32).at[:Cin, :].set(tap)
            # shift[src_w, w] = 1  iff  src_w == w + dx - 1 (off-diagonal block band)
            shift = jnp.eye(W, W, k=1 - dx, dtype=jnp.float32)
            band = band + jnp.kron(shift, tap)
        bands.append(band)
    w1b = jnp.concatenate(bands, axis=0).astype(jnp.bfloat16)                  # (3*WCp, WM)

    w2mat = jnp.transpose(w2[:, :, 0, 0]).astype(jnp.float32)                  # (Cmid, Cin)
    w2mat = jnp.zeros((Cmid, cin_pad), jnp.float32).at[:, :Cin].set(w2mat)
    w2b = jnp.kron(jnp.eye(W, dtype=jnp.float32), w2mat).astype(jnp.bfloat16)  # (WM, WCp)

    b1t = jnp.tile(b1.astype(jnp.float32), W).reshape(1, WM)
    b2p = jnp.zeros((cin_pad,), jnp.float32).at[:Cin].set(b2.astype(jnp.float32))
    b2t = jnp.tile(b2p, W).reshape(1, WCp)
    return w1b, b1t, w2b, b2t


def resblock_forward(x_nchw, packed, *, block_n=None):
    """x_nchw: (N, Cin, H, W); packed from pack_resblock_weights. Returns (N, Cin, H, W)."""
    w1b, b1t, w2b, b2t = packed
    N, Cin, H, W = x_nchw.shape
    WM, WCp = w2b.shape
    cin_pad = WCp // W

    if block_n is None:
        block_n = _pick_block_n(N)          # B images per grid step -> matmul M = B*H rows
    grid_n = N // block_n

    # NCHW -> (N, H, W, Cin_pad) -> (N, H, W*Cin_pad) bf16 (halves the input DMA),
    # with a 1-row zero halo top/bottom for the conv padding along H.
    x = jnp.transpose(x_nchw, (0, 2, 3, 1))
    x = jnp.pad(x, ((0, 0), (0, 0), (0, 0), (0, cin_pad - Cin)))
    x = x.reshape(N, H, WCp).astype(jnp.bfloat16)
    xp = jnp.pad(x, ((0, 0), (1, 1), (0, 0)))

    out = pl.pallas_call(
        resblock_kernel,
        out_shape=jax.ShapeDtypeStruct((N, H, WCp), x_nchw.dtype),
        grid_spec=pltpu.PrefetchScalarGridSpec(
            num_scalar_prefetch=0,
            grid=(grid_n,),
            in_specs=[
                pl.BlockSpec((block_n, H + 2, WCp), lambda n: (n, 0, 0)),
                pl.BlockSpec((3 * WCp, WM), lambda n: (0, 0)),
                pl.BlockSpec((1, WM), lambda n: (0, 0)),
                pl.BlockSpec((WM, WCp), lambda n: (0, 0)),
                pl.BlockSpec((1, WCp), lambda n: (0, 0)),
            ],
            out_specs=pl.BlockSpec((block_n, H, WCp), lambda n: (n, 0, 0)),
        ),
        compiler_params=pltpu.CompilerParams(
            dimension_semantics=("parallel",)),
    )(xp, w1b, b1t, w2b, b2t)

    # Strip the channel pad, back to NCHW (reshape is free; transpose at the API boundary).
    out = out.reshape(N, H, W, cin_pad)[..., :Cin]
    return jnp.transpose(out, (0, 3, 1, 2))


def resblock_ref(x, w1, b1, w2, b2):
    """Pure-JAX reference matching the torch module's actual forward semantics:
    the first nn.ReLU(inplace=True) mutates `input`, so the skip adds relu(x)."""
    h = jax.nn.relu(x)
    y = jax.lax.conv_general_dilated(
        h, w1, window_strides=(1, 1), padding=((1, 1), (1, 1)),
        dimension_numbers=("NCHW", "OIHW", "NCHW")) + b1[None, :, None, None]
    y = jax.nn.relu(y)
    y = jax.lax.conv_general_dilated(
        y, w2, window_strides=(1, 1), padding=((0, 0), (0, 0)),
        dimension_numbers=("NCHW", "OIHW", "NCHW")) + b2[None, :, None, None]
    return y + h


if __name__ == "__main__":
    N, Cin, Cmid, H, W = 2, 4, 8, 16, 16

    key = jax.random.PRNGKey(0)
    k1, k2, k3, k4, k5 = jax.random.split(key, 5)
    x = jax.random.normal(k1, (N, Cin, H, W), jnp.float32)
    w1 = 0.1 * jax.random.normal(k2, (Cmid, Cin, 3, 3), jnp.float32)   # Conv2d(in, ch, 3)
    b1 = 0.1 * jax.random.normal(k3, (Cmid,), jnp.float32)
    w2 = 0.1 * jax.random.normal(k4, (Cin, Cmid, 1, 1), jnp.float32)   # Conv2d(ch, in, 1)
    b2 = 0.1 * jax.random.normal(k5, (Cin,), jnp.float32)

    # Pack once (hoisted out of the forward), reuse across calls.
    cin_pad = pick_cin_pad(Cin, W)          # 4 -> 8 so W*Cin_pad = 128 (lane-dense stores)
    packed = pack_resblock_weights(w1, b1, w2, b2, W=W, cin_pad=cin_pad)

    fwd = jax.jit(resblock_forward)
    out = fwd(x, packed)
    jax.block_until_ready(out)

    ref = resblock_ref(x, w1, b1, w2, b2)
    assert out.shape == ref.shape and out.dtype == ref.dtype
    err = float(jnp.max(jnp.abs(out - ref)))
    # bf16 activation DMA + bf16 MXU operands (f32 accumulation) vs. a pure-f32 reference
    # -> bf16-level tolerance.
    assert jnp.allclose(out, ref, atol=5e-2, rtol=3e-2), f"max abs err = {err}"

    print("KERNEL_OK")
</pallas_src>

<mosaic_0001>
module attributes {stable_mosaic.version = 11 : i64} {
  func.func @resblock_kernel(%arg0: i32, %arg1: memref<2x18x128xbf16, #tpu.memory_space<vmem>>, %arg2: memref<384x128xbf16, #tpu.memory_space<vmem>>, %arg3: memref<1x128xf32, #tpu.memory_space<vmem>>, %arg4: memref<128x128xbf16, #tpu.memory_space<vmem>>, %arg5: memref<1x128xf32, #tpu.memory_space<vmem>>, %arg6: memref<2x16x128xf32, #tpu.memory_space<vmem>>) attributes {dimension_semantics = [#tpu.dimension_semantics<parallel>], iteration_bounds = array<i64: 1>, scalar_prefetch = 0 : i64, scratch_operands = 0 : i64, tpu.core_type = #tpu.core_type<tc>, window_params = [{transform_indices = @transform_0, window_bounds = array<i64: 2, 18, 128>}, {pipeline_mode = #tpu.pipeline_mode<synchronous>, transform_indices = @transform_1, window_bounds = array<i64: 384, 128>}, {pipeline_mode = #tpu.pipeline_mode<synchronous>, transform_indices = @transform_2, window_bounds = array<i64: 1, 128>}, {pipeline_mode = #tpu.pipeline_mode<synchronous>, transform_indices = @transform_3, window_bounds = array<i64: 128, 128>}, {pipeline_mode = #tpu.pipeline_mode<synchronous>, transform_indices = @transform_4, window_bounds = array<i64: 1, 128>}, {transform_indices = @transform_5, window_bounds = array<i64: 2, 16, 128>}]} {
    %c0 = arith.constant 0 : index
    %c0_0 = arith.constant 0 : index
    %c0_1 = arith.constant 0 : index
    %0 = vector.load %arg1[%c0, %c0_0, %c0_1] : memref<2x18x128xbf16, #tpu.memory_space<vmem>>, vector<2x18x128xbf16>
    %cst = arith.constant 0.000000e+00 : bf16
    %1 = vector.broadcast %cst : bf16 to vector<2x18x128xbf16>
    %2 = arith.maximumf %0, %1 : vector<2x18x128xbf16>
    %3 = vector.extract_strided_slice %2 {offsets = [0, 0, 0], sizes = [2, 16, 128], strides = [1, 1, 1]} : vector<2x18x128xbf16> to vector<2x16x128xbf16>
    %4 = vector.shape_cast %3 : vector<2x16x128xbf16> to vector<32x128xbf16>
    %5 = vector.extract_strided_slice %2 {offsets = [0, 1, 0], sizes = [2, 16, 128], strides = [1, 1, 1]} : vector<2x18x128xbf16> to vector<2x16x128xbf16>
    %6 = vector.shape_cast %5 : vector<2x16x128xbf16> to vector<32x128xbf16>
    %7 = vector.extract_strided_slice %2 {offsets = [0, 2, 0], sizes = [2, 16, 128], strides = [1, 1, 1]} : vector<2x18x128xbf16> to vector<2x16x128xbf16>
    %8 = vector.shape_cast %7 : vector<2x16x128xbf16> to vector<32x128xbf16>
    %9 = tpu.concatenate %4, %6, %8 in 1 : vector<32x128xbf16>, vector<32x128xbf16>, vector<32x128xbf16> -> vector<32x384xbf16>
    %c0_2 = arith.constant 0 : index
    %c0_3 = arith.constant 0 : index
    %10 = vector.load %arg2[%c0_2, %c0_3] : memref<384x128xbf16, #tpu.memory_space<vmem>>, vector<384x128xbf16>
    %cst_4 = arith.constant dense<0.000000e+00> : vector<32x128xf32>
    %11 = tpu.matmul %9, %10, %cst_4 {dimension_numbers = #tpu.dot_dimension_numbers<[1], [0], [0], [1], [0, 0, 1, 1], [], []>} : vector<32x384xbf16>, vector<384x128xbf16>, vector<32x128xf32> -> vector<32x128xf32>
    %c0_5 = arith.constant 0 : index
    %c0_6 = arith.constant 0 : index
    %12 = vector.load %arg3[%c0_5, %c0_6] : memref<1x128xf32, #tpu.memory_space<vmem>>, vector<1x128xf32>
    %13 = vector.broadcast %12 : vector<1x128xf32> to vector<32x128xf32>
    %14 = arith.addf %11, %13 : vector<32x128xf32>
    %cst_7 = arith.constant 0.000000e+00 : f32
    %15 = vector.broadcast %cst_7 : f32 to vector<32x128xf32>
    %16 = arith.maximumf %14, %15 : vector<32x128xf32>
    %17 = arith.truncf %16 : vector<32x128xf32> to vector<32x128xbf16>
    %c0_8 = arith.constant 0 : index
    %c0_9 = arith.constant 0 : index
    %18 = vector.load %arg4[%c0_8, %c0_9] : memref<128x128xbf16, #tpu.memory_space<vmem>>, vector<128x128xbf16>
    %cst_10 = arith.constant dense<0.000000e+00> : vector<32x128xf32>
    %19 = tpu.matmul %17, %18, %cst_10 {dimension_numbers = #tpu.dot_dimension_numbers<[1], [0], [0], [1], [0, 0, 1, 1], [], []>} : vector<32x128xbf16>, vector<128x128xbf16>, vector<32x128xf32> -> vector<32x128xf32>
    %c0_11 = arith.constant 0 : index
    %c0_12 = arith.constant 0 : index
    %20 = vector.load %arg5[%c0_11, %c0_12] : memref<1x128xf32, #tpu.memory_space<vmem>>, vector<1x128xf32>
    %21 = vector.broadcast %20 : vector<1x128xf32> to vector<32x128xf32>
    %22 = arith.addf %19, %21 : vector<32x128xf32>
    %23 = arith.extf %6 : vector<32x128xbf16> to vector<32x128xf32>
    %24 = arith.addf %22, %23 : vector<32x128xf32>
    %25 = vector.shape_cast %24 : vector<32x128xf32> to vector<2x16x128xf32>
    %c0_13 = arith.constant 0 : index
    %c0_14 = arith.constant 0 : index
    %c0_15 = arith.constant 0 : index
    %26 = vector.load %arg6[%c0_13, %c0_14, %c0_15] : memref<2x16x128xf32, #tpu.memory_space<vmem>>, vector<2x16x128xf32>
    tpu.vector_store %arg6[%c0_13, %c0_14, %c0_15], %25 {strides = array<i32>} : memref<2x16x128xf32, #tpu.memory_space<vmem>>, vector<2x16x128xf32>,
    return
  }
  func.func @transform_0(%arg0: i32) -> (i32, i32, i32) {
    %c0_i32 = arith.constant 0 : i32
    %c0_i32_0 = arith.constant 0 : i32
    %c0_i32_1 = arith.constant 0 : i32
    return %arg0, %c0_i32, %c0_i32_0 : i32, i32, i32
  }
  func.func @transform_1(%arg0: i32) -> (i32, i32) {
    %c0_i32 = arith.constant 0 : i32
    %c0_i32_0 = arith.constant 0 : i32
    %c0_i32_1 = arith.constant 0 : i32
    return %c0_i32, %c0_i32_0 : i32, i32
  }
  func.func @transform_2(%arg0: i32) -> (i32, i32) {
    %c0_i32 = arith.constant 0 : i32
    %c0_i32_0 = arith.constant 0 : i32
    %c0_i32_1 = arith.constant 0 : i32
    return %c0_i32, %c0_i32_0 : i32, i32
  }
  func.func @transform_3(%arg0: i32) -> (i32, i32) {
    %c0_i32 = arith.constant 0 : i32
    %c0_i32_0 = arith.constant 0 : i32
    %c0_i32_1 = arith.constant 0 : i32
    return %c0_i32, %c0_i32_0 : i32, i32
  }
  func.func @transform_4(%arg0: i32) -> (i32, i32) {
    %c0_i32 = arith.constant 0 : i32
    %c0_i32_0 = arith.constant 0 : i32
    %c0_i32_1 = arith.constant 0 : i32
    return %c0_i32, %c0_i32_0 : i32, i32
  }
  func.func @transform_5(%arg0: i32) -> (i32, i32, i32) {
    %c0_i32 = arith.constant 0 : i32
    %c0_i32_0 = arith.constant 0 : i32
    %c0_i32_1 = arith.constant 0 : i32
    return %arg0, %c0_i32, %c0_i32_0 : i32, i32, i32
  }
}

</mosaic_0001>

<bundles_post_ra>
// kernel: resblock_forward.1
= control target key start
LH: loop header
LB: loop body
LE: loop exit
PB: predicated region body
PF: predicated region fallthrough
CT: control target
= control target key end

     0   :  { %vm33_vm0 = vsmask.f32 3328  ;;  %vm94_vm1 = vcmask 1042432   ;;  %vm95_vm2 = vcmask 1046532   ;;  %v737_v25 = vmov 0   ;;  %s956_s1 = inlined_call_operand.vmem [shape: bf16[384,128], index: 1, kind: input, shape index: {}]   ;;  %s957_s0 = inlined_call_operand.vmem [shape: bf16[2,18,128], index: 0, kind: input, shape index: {}]   ;;  %s958_s3 = inlined_call_operand.vmem [shape: bf16[128,128], index: 3, kind: input, shape index: {}]   ;;  %s959_s2 = inlined_call_operand.vmem [shape: f32[1,128], index: 2, kind: input, shape index: {}]   ;;  %s960_s4 = inlined_call_operand.vmem [shape: f32[1,128], index: 4, kind: input, shape index: {}]   ;;  %s961_s5 = inlined_call_operand.vmem [shape: f32[2,16,128], index: 5, kind: output, shape index: {}]  }
   0x1   :  { %v705_v0 = vld [vmem:[%s956_s1 + $0x78] sm:$0xff]   ;;  %v707_v2 = vld [vmem:[%s956_s1 + $0x70] sm:$0xff]   ;;  %v710_v5 = vld [vmem:[%s956_s1 + $0x68] sm:$0xff]   ;;  %vm34_vm3 = vsmask.f32 7440 }
   0x2   :  { %v706_v1 = vld [vmem:[%s956_s1 + $0x38] sm:$0xff]   ;;  %616 = vmatprep.subr.bf16.mxu0 %v705_v0  ;;  %v709_v4 = vld [vmem:[%s956_s1 + $0x30] sm:$0xff]   ;;  %v712_v7 = vld [vmem:[%s956_s1 + $0x28] sm:$0xff]  }
   0x3   :  { %617 = vmatpush3.bf16.msra.mxu0 %v706_v1  ;;  %v708_v3 = vld [vmem:[%s956_s1 + $0xb8] sm:$0xff]   ;;  %v711_v6 = vld [vmem:[%s956_s1 + $0xb0] sm:$0xff]   ;;  %v713_v8 = vld [vmem:[%s956_s1 + $0x60] sm:$0xff]  }
   0x4   :  { %618 = vmatprep.subr.bf16.mxu0 %v707_v2  ;;  %664 = vmatprep.subr.bf16.mxu1 %v708_v3  ;;  %v714_v9 = vld [vmem:[%s956_s1 + $0xa8] sm:$0xff]   ;;  %v715_v10 = vld [vmem:[%s956_s1 + $0x20] sm:$0xff]   ;;  %v716_v11 = vld [vmem:[%s956_s1 + $0x58] sm:$0xff]  }
   0x5   :  { %665 = vmatpush3.bf16.msra.mxu1 %v708_v3  ;;  %v717_v12 = vld [vmem:[%s956_s1 + $0xa0] sm:$0xff]   ;;  %v718_v13 = vld [vmem:[%s956_s1 + $0x18] sm:$0xff]   ;;  %v719_v15 = vld [vmem:[%s956_s1 + $0x50] sm:$0xff]  }
   0x6   :  { %666 = vmatprep.subr.bf16.mxu1 %v711_v6  ;;  %v720_v14 = vld [vmem:[%s956_s1 + $0x98] sm:$0xff]   ;;  %v721_v16 = vld [vmem:[%s956_s1 + $0x10] sm:$0xff]   ;;  %v722_v18 = vld [vmem:[%s956_s1 + $0x48] sm:$0xff]  }
   0x7   :  { %619 = vmatpush3.bf16.msra.mxu0 %v709_v4  ;;  %v723_v17 = vld [vmem:[%s956_s1 + $0x90] sm:$0xff]   ;;  %v724_v19 = vld [vmem:[%s956_s1 + $0x8] sm:$0xff]   ;;  %v21_v21 = vld [vmem:[%s957_s0] sm:$0xf] }
   0x8   :  { %620 = vmatprep.subr.bf16.mxu0 %v710_v5  ;;  %v726_v20 = vld [vmem:[%s956_s1 + $0x88] sm:$0xff]   ;;  %v22_v22 = vld [vmem:[%s957_s0 + $0x4] sm:$0xf]  ;;  %v843_v26 = vmax.bf16 %v737_v25, %v21_v21  ;;  %vm862_vm4 = vmor %vm94_vm1, %vm95_vm2 }
   0x9   :  { %667 = vmatpush3.bf16.msra.mxu1 %v711_v6  ;;  %v23_v23 = vld [vmem:[%s957_s0 + $0x8] sm:$0x1]  ;;  %v725_v24 = vld [vmem:[%s956_s1 + $0x40] sm:$0xff]   ;;  %v845_v27 = vmax.bf16 %v737_v25, %v22_v22  ;;  %v24_v31 = vld [vmem:[%s957_s0 + $0xc] sm:$0xf] }
   0xa   :  { %668 = vmatprep.subr.bf16.mxu1 %v714_v9  ;;  %v29_v28 = vmax.bf16 %v737_v25, %v23_v23  ;;  %v727_v29 = vld [vmem:[%s956_s1] sm:$0xff]   ;;  %v37_v32 = vshrl.u32 %v843_v26, 16  ;;  %v40_v33 = vshll.u32 %v843_v26, 16  ;;  %v25_v37 = vld [vmem:[%s957_s0 + $0x10] sm:$0xf]  ;;  %v574_v39 = vrot.slane %v843_v26, 9  ;;  %vm879_vm5 = vmor %vm33_vm0, %vm34_vm3 }
   0xb   :  { %621 = vmatpush3.bf16.msra.mxu0 %v712_v7  ;;  %v728_v30 = vld [vmem:[%s956_s1 + $0x80] sm:$0xff]   ;;  %v46_v34 = vshll.u32 %v845_v27, 16  ;;  %v50_v35 = vshrl.u32 %v845_v27, 16  ;;  %v99_v40 = vrot.slane %v845_v27, 5  ;;  %v26_v41 = vld [vmem:[%s957_s0 + $0x14] sm:$0x1]  ;;  %v30_v54 = vmax.bf16 %v737_v25, %v24_v31 }
   0xc   :  { %622 = vmatprep.subr.bf16.mxu0 %v713_v8  ;;  %v56_v38 = vshll.u32 %v29_v28, 16  ;;  %v729_v42 = vld [vmem:[%s958_s3 + $0x38] sm:$0xff]   ;;  %v39_v43 = vrot.slane %v37_v32, 4  ;;  %v42_v44 = vrot.slane %v40_v33, 5  ;;  %v102_v51 = vrot.slane %v29_v28, 5  ;;  %v730_v7 = vld [vmem:[%s958_s3 + $0x30] sm:$0xff]  }
   0xd   :  { %669 = vmatpush3.bf16.msra.mxu1 %v714_v9  ;;  %v48_v45 = vrot.slane %v46_v34, 5  ;;  %v52_v46 = vrot.slane %v50_v35, 4  ;;  %v100_v49 = vsel %vm862_vm4, %v574_v39, %v99_v40  ;;  %v101_v50 = vrot.slane %v99_v40, 4  ;;  %v732_v28 = vld [vmem:[%s958_s3 + $0x20] sm:$0xff]   ;;  %v735_v31 = vld [vmem:[%s958_s3 + $0x8] sm:$0xff]  }
   0xe   :  { %670 = vmatprep.subr.bf16.mxu1 %v717_v12  ;;  %v58_v48 = vrot.slane %v56_v38, 5  ;;  %v43_v52 = vor.u32 %v42_v44, %v39_v43  ;;  %v31_v55 = vmax.bf16 %v737_v25, %v25_v37  ;;  %v576_v56 = vcombine.low %v843_v26, %v845_v27  ;;  %v731_v27 = vld [vmem:[%s958_s3 + $0x28] sm:$0xff]   ;;  %v736_v32 = vld [vmem:[%s958_s3] sm:$0xff]  }
   0xf   :  { %623 = vmatpush3.bf16.msra.mxu0 %v715_v10  ;;  %v53_v53 = vor.u32 %v52_v46, %v48_v45  ;;  %v103_v57 = vsel %vm862_vm4, %v101_v50, %v102_v51  ;;  %v32_v58 = vmax.bf16 %v737_v25, %v26_v41  ;;  %v575_v62 = vrot.slane %v30_v54, 9  ;;  %v582_v35 = vld [vmem:[%s959_s2] ss:$0 sm:$0xff] }
  0x10   :  { %624 = vmatprep.subr.bf16.mxu0 %v716_v11  ;;  %v44_v59 = vrot.slane %v43_v52, 4  ;;  %v580_v61 = vcombine.low %v100_v49, %v103_v57  ;;  %v106_v63 = vrot.slane %v31_v55, 5  ;;  %v61_v1 = vshrl.u32 %v30_v54, 16 }
  0x11   :  { %671 = vmatpush3.bf16.msra.mxu1 %v717_v12  ;;  %v54_v60 = vrot.slane %v53_v53, 4  ;;  %v109_v0 = vrot.slane %v32_v58, 5  ;;  %v64_v2 = vshll.u32 %v30_v54, 16  ;;  %v70_v5 = vshll.u32 %v31_v55, 16 }
  0x12   :  { %672 = vmatprep.subr.bf16.mxu1 %v720_v14  ;;  %v891_v3 = vsel %vm879_vm5, %v44_v59, %v48_v45  ;;  %680 = vmatprep.mubr.bf16.mxu1 %v580_v61  ;;  %v74_v6 = vshrl.u32 %v31_v55, 16  ;;  %v107_v9 = vsel %vm862_vm4, %v575_v62, %v106_v63  ;;  %v108_v10 = vrot.slane %v106_v63, 4 }
  0x13   :  { %625 = vmatpush3.bf16.msra.mxu0 %v718_v13  ;;  %v895_v4 = vsel %vm879_vm5, %v54_v60, %v58_v48  ;;  %v63_v11 = vrot.slane %v61_v1, 4  ;;  %v66_v12 = vrot.slane %v64_v2, 5  ;;  %v72_v13 = vrot.slane %v70_v5, 5 }
  0x14   :  { %626 = vmatprep.subr.bf16.mxu0 %v719_v15  ;;  %v578_v8 = vcombine.low %v891_v3, %v895_v4  ;;  %v80_v15 = vshll.u32 %v32_v58, 16  ;;  %v577_v25 = vcombine.low %v30_v54, %v31_v55  ;;  %v558_v5 = vunpack.c.l.bf16 %v891_v3 }
  0x15   :  { %673 = vmatpush3.bf16.msra.mxu1 %v720_v14  ;;  %v76_v14 = vrot.slane %v74_v6, 4 }
  0x16   :  { %674 = vmatprep.subr.bf16.mxu1 %v723_v17  ;;  %366 = vmatprep.mubr.bf16.mxu0 %v578_v8 }
  0x17   :  { %627 = vmatpush3.bf16.msra.mxu0 %v721_v16  ;;  %v110_v16 = vsel %vm862_vm4, %v108_v10, %v109_v0  ;;  %v607_v0 = vld [vmem:[%s960_s4] ss:$0 sm:$0xff] }
  0x18   :  { %628 = vmatprep.subr.bf16.mxu0 %v722_v18  ;;  %v581_v18 = vcombine.low %v107_v9, %v110_v16 }
  0x19   :  { %675 = vmatpush3.bf16.msra.mxu1 %v723_v17  ;;  %v67_v17 = vor.u32 %v66_v12, %v63_v11  ;;  %v559_v12 = vunpack.c.l.bf16 %v895_v4 }
  0x1a   :  { %676 = vmatprep.subr.bf16.mxu1 %v726_v20 }
  0x1b   :  { %629 = vmatpush3.bf16.msra.mxu0 %v724_v19  ;;  %v77_v19 = vor.u32 %v76_v14, %v72_v13  ;;  %v68_v21 = vrot.slane %v67_v17, 4 }
  0x1c   :  { %630 = vmatprep.subr.bf16.mxu0 %v725_v24 }
  0x1d   :  { %677 = vmatpush3.bf16.msra.mxu1 %v726_v20  ;;  %v82_v20 = vrot.slane %v80_v15, 5  ;;  %v78_v22 = vrot.slane %v77_v19, 4  ;;  %v908_v23 = vsel %vm879_vm5, %v68_v21, %v72_v13 }
  0x1e   :  { %678 = vmatprep.subr.bf16.mxu1 %v728_v30  ;;  %v560_v1 = vunpack.c.l.bf16 %v908_v23 }
  0x1f   :  { %631 = vmatpush3.bf16.msra.mxu0 %v727_v29  ;;  %v912_v24 = vsel %vm879_vm5, %v78_v22, %v82_v20  ;;  %v733_v29 = vld [vmem:[%s958_s3 + $0x18] sm:$0xff]  }
  0x20   :  { %684 = vmatprep.subr.bf16.mxu0 %v729_v42  ;;  %v579_v26 = vcombine.low %v908_v23, %v912_v24  ;;  %v561_v10 = vunpack.c.l.bf16 %v912_v24 }
  0x21   :  { %679 = vmatpush3.bf16.msra.mxu1 %v728_v30  ;;  %v734_v30 = vld [vmem:[%s958_s3 + $0x10] sm:$0xff]  }
  0x22   :  { %367 = vmatmul.mubr.bf16.vlgmr.msra.gmra.mxu0 %v576_v56 }
  0x23   :  { %685 = vmatpush3.bf16.msra.mxu0 %v729_v42  ;;  %374 = vmatprep.mubr.bf16.mxu0 %v579_v26 }
  0x24   :  { %686 = vmatprep.subr.bf16.mxu0 %v730_v7  ;;  %681 = vmatmul.mubr.bf16.vlgmr.msra.gmra.mxu1 %v581_v18 }
  0x27   :  { %687 = vmatpush3.bf16.msra.mxu0 %v730_v7 }
  0x28   :  { %688 = vmatprep.subr.bf16.mxu0 %v731_v27 }
  0x2a   :  { %375 = vmatmul.mubr.bf16.gmra.mxu0 %v577_v25 }
  0x2b   :  { %689 = vmatpush3.bf16.msra.mxu0 %v731_v27 }
  0x2c   :  { %690 = vmatprep.subr.bf16.mxu0 %v732_v28 }
  0x2f   :  { %691 = vmatpush3.bf16.msra.mxu0 %v732_v28 }
  0x30   :  { %692 = vmatprep.subr.bf16.mxu0 %v733_v29 }
  0x33   :  { %693 = vmatpush3.bf16.msra.mxu0 %v733_v29 }
  0x34   :  { %694 = vmatprep.subr.bf16.mxu0 %v734_v30 }
  0x37   :  { %695 = vmatpush3.bf16.msra.mxu0 %v734_v30 }
  0x38   :  { %696 = vmatprep.subr.bf16.mxu0 %v735_v31 }
  0x3b   :  { %697 = vmatpush3.bf16.msra.mxu0 %v735_v31 }
  0x3c   :  { %698 = vmatprep.subr.bf16.mxu0 %v736_v32 }
  0x3f   :  { %699 = vmatpush3.bf16.msra.mxu0 %v736_v32 }
  0xe2   :  { %v632_v33 = vpop.f32.mrf.mxu0 }
  0xe4   :  { %v633_v34 = vpop.f32.mrf.mxu0  ;;  %v682_v37 = vpop.f32.mrf.mxu1 }
  0xe5   :  { %v634_v36 = vadd.f32 %v633_v34, %v632_v33 }
  0xe6   :  { %v635_v38 = vpop.f32.mrf.mxu0  ;;  %v417_v40 = vpop.f32.mrf.mxu1 }
  0xe7   :  { %v369_v39 = vadd.f32 %v634_v36, %v582_v35 }
  0xe8   :  { %v636_v41 = vpop.f32.mrf.mxu0  ;;  %v683_v43 = vpop.f32.mrf.mxu1 }
  0xe9   :  { %v637_v42 = vadd.f32 %v636_v41, %v635_v38  ;;  %v418_v44 = vadd.f32 %v417_v40, %v369_v39 }
  0xea   :  { %v638_v45 = vpop.f32.mrf.mxu0  ;;  %v420_v47 = vpop.f32.mrf.mxu1 }
  0xeb   :  { %v372_v46 = vadd.f32 %v637_v42, %v582_v35  ;;  %v432_v51 = vmax.f32 %v418_v44, 0.0 }
  0xec   :  { %v639_v48 = vpop.f32.mrf.mxu0 }
  0xed   :  { %v421_v49 = vadd.f32 %v420_v47, %v372_v46  ;;  %v640_v50 = vadd.f32 %v639_v48, %v638_v45 }
  0xee   :  { %v641_v53 = vpop.f32.mrf.mxu0 }
  0xef   :  { %v433_v52 = vmax.f32 %v421_v49, 0.0  ;;  %v377_v54 = vadd.f32 %v640_v50, %v582_v35 }
  0xf0   :  { %v642_v56 = vpop.f32.mrf.mxu0 }
  0xf1   :  { %v436_v55 = vpack.c.bf16 %v433_v52, %v432_v51  ;;  %v643_v57 = vadd.f32 %v642_v56, %v641_v53  ;;  %v426_v58 = vadd.f32 %v682_v37, %v377_v54 }
  0xf3   :  { %700 = vmatprep.mubr.bf16.mxu0 %v436_v55  ;;  %v380_v59 = vadd.f32 %v643_v57, %v582_v35  ;;  %v434_v61 = vmax.f32 %v426_v58, 0.0 }
  0xf5   :  { %v429_v60 = vadd.f32 %v683_v43, %v380_v59 }
  0xf7   :  { %v435_v62 = vmax.f32 %v429_v60, 0.0 }
  0xf9   :  { %v437_v63 = vpack.c.bf16 %v435_v62, %v434_v61 }
  0xfb   :  { %701 = vmatmul.mubr.bf16.vlgmr.msra.gmra.mxu0 %v437_v63 }
 0x1bb   :  { %v702_v2 = vpop.f32.mrf.mxu0 }
 0x1bc   :  { %v552_v6 = vadd.f32 %v702_v2, %v607_v0 }
 0x1bd   :  { %v543_v7 = vpop.f32.mrf.mxu0 }
 0x1be   :  { %v564_v8 = vadd.f32 %v560_v1, %v552_v6  ;;  %v544_v9 = vadd.f32 %v607_v0, %v543_v7 }
 0x1bf   :  { %v703_v11 = vpop.f32.mrf.mxu0 }
 0x1c0   :  { %568 = vst [vmem:[%s961_s5 + $0x10] sm:$0xff] %v564_v8  ;;  %v562_v13 = vadd.f32 %v558_v5, %v544_v9  ;;  %v555_v14 = vadd.f32 %v703_v11, %v607_v0 }
 0x1c1   :  { %v546_v15 = vpop.f32.mrf.mxu0 }
 0x1c2   :  { %566 = vst [vmem:[%s961_s5] sm:$0xff] %v562_v13  ;;  %v565_v3 = vadd.f32 %v561_v10, %v555_v14  ;;  %v547_v16 = vadd.f32 %v607_v0, %v546_v15 }
 0x1c4   :  { %569 = vst [vmem:[%s961_s5 + $0x18] sm:$0xff] %v565_v3  ;;  %v563_v17 = vadd.f32 %v559_v12, %v547_v16 }
 0x1c6   :  { %567 = vst [vmem:[%s961_s5 + $0x8] sm:$0xff] %v563_v17 }

</bundles_post_ra>
